<compile_context>
chip_gen: v7x
topology: tpu7x:2x2x1
jax: 0.10.0
libtpu: 0.0.40
codegen_flags: <defaults>
</compile_context>

<pallas_src>
import jax
import jax.numpy as jnp
from jax.experimental import pallas as pl
from jax.experimental.pallas import tpu as pltpu

EMBED_SIZE = 2048       # ClassificationHead(embed_size=2048)
CLASS_SIZE = 5          # ClassificationHead(class_size=5)
CLASS_PAD = 8           # pad class dim 5 -> 8 (sublane multiple is plenty here)
NEG_SENTINEL = -1.0e30  # finite "minus infinity" baked into padded bias cols


def _cls_head_logsoftmax_kernel(h_ref, w_ref, b_ref, o_ref):
    """logits = h @ W + b ; out = log_softmax(logits).

    Padded class columns have zero weights and a -1e30 bias, so they are
    automatically excluded from the max / logsumexp (exp underflows to 0).
    """
    logits = jnp.dot(
        h_ref[...], w_ref[...], preferred_element_type=jnp.float32
    ) + b_ref[...]                                           # (B, Cp) f32

    m = jnp.max(logits, axis=-1, keepdims=True)
    lse = m + jnp.log(jnp.sum(jnp.exp(logits - m), axis=-1, keepdims=True))
    o_ref[...] = logits - lse


def prepare_cls_params(weight, bias):
    """One-time parameter prep (hoisted out of the per-call path).

    weight: [C, E] f32 (torch Linear layout), bias: [C] f32.
    Returns (w_prepared [E, CLASS_PAD], b_prepared [1, CLASS_PAD]).
    """
    C, E = weight.shape
    assert E == EMBED_SIZE and C == CLASS_SIZE
    w = jnp.zeros((E, CLASS_PAD), jnp.float32).at[:, :C].set(
        weight.astype(jnp.float32).T)
    b = jnp.full((1, CLASS_PAD), NEG_SENTINEL, jnp.float32).at[0, :C].set(
        bias.astype(jnp.float32))
    return w, b


def classification_head_log_softmax(hidden_state, w_prepared, b_prepared):
    """hidden_state: [B, E] f32 (last-layer / last-token hidden state).
    Returns log_softmax(hidden @ W.T + b), shape [B, CLASS_SIZE]."""
    B, E = hidden_state.shape
    assert E == EMBED_SIZE

    out = pl.pallas_call(
        _cls_head_logsoftmax_kernel,
        out_shape=jax.ShapeDtypeStruct((B, CLASS_PAD), jnp.float32),
        in_specs=[
            pl.BlockSpec(memory_space=pltpu.MemorySpace.VMEM),  # hidden
            pl.BlockSpec(memory_space=pltpu.MemorySpace.VMEM),  # weight
            pl.BlockSpec(memory_space=pltpu.MemorySpace.VMEM),  # bias
        ],
        out_specs=pl.BlockSpec(memory_space=pltpu.MemorySpace.VMEM),
    )(hidden_state.astype(jnp.float32), w_prepared, b_prepared)

    return out[:, :CLASS_SIZE]


def discriminator_forward(hidden_last_token, w_prepared, b_prepared):
    """Pallas implementation of Discriminator.forward starting from the
    transformer's last-layer / last-token hidden state (steps 4-5)."""
    return classification_head_log_softmax(
        hidden_last_token, w_prepared, b_prepared)


if __name__ == "__main__":
    key = jax.random.PRNGKey(0)
    k_h, k_w, k_b, k_tok = jax.random.split(key, 4)

    B = 2
    # Stand-in for x[-1][:, -1, :] (last-layer, last-token hidden state).
    hidden_last_token = jax.random.normal(k_h, (B, EMBED_SIZE), jnp.float32)

    # Deterministic ClassificationHead parameters (torch.nn.Linear(2048, 5)):
    bound = 1.0 / (EMBED_SIZE ** 0.5)
    cls_weight = jax.random.uniform(
        k_w, (CLASS_SIZE, EMBED_SIZE), jnp.float32, -bound, bound)
    cls_bias = jax.random.uniform(
        k_b, (CLASS_SIZE,), jnp.float32, -bound, bound)

    # spltoken parameter from __init__ (randn(1,1,1024).repeat(10,1,1));
    # constructed deterministically for completeness, unused because the
    # pretrained BART transformer it feeds is not reproduced here.
    spltoken = jnp.tile(jax.random.normal(k_tok, (1, 1, 1024), jnp.float32),
                        (10, 1, 1))
    del spltoken  # TODO(synk): consumed by BART forward_transformer_embed only.

    # One-time parameter prep (transpose/pad), then the fused Pallas head.
    w_prep, b_prep = prepare_cls_params(cls_weight, cls_bias)
    out = discriminator_forward(hidden_last_token, w_prep, b_prep)
    out = jax.block_until_ready(out)

    # Reference: plain JAX linear + log_softmax.
    ref_logits = hidden_last_token @ cls_weight.T + cls_bias
    ref = jax.nn.log_softmax(ref_logits, axis=-1)

    assert out.shape == (B, CLASS_SIZE)
    assert bool(jnp.all(jnp.abs(jnp.sum(jnp.exp(out), axis=-1) - 1.0) < 1e-4))
    assert bool(jnp.all(jnp.abs(out - ref) < 1e-4))

    print("KERNEL_OK")
</pallas_src>

<mosaic_0001>
module attributes {stable_mosaic.version = 11 : i64} {
  func.func @_cls_head_logsoftmax_kernel(%arg0: memref<2x2048xf32, #tpu.memory_space<vmem>>, %arg1: memref<2048x8xf32, #tpu.memory_space<vmem>>, %arg2: memref<1x8xf32, #tpu.memory_space<vmem>>, %arg3: memref<2x8xf32, #tpu.memory_space<vmem>>) attributes {dimension_semantics = [], scalar_prefetch = 0 : i64, scratch_operands = 0 : i64, tpu.core_type = #tpu.core_type<tc>} {
    %c0 = arith.constant 0 : index
    %c0_0 = arith.constant 0 : index
    %0 = vector.load %arg0[%c0, %c0_0] : memref<2x2048xf32, #tpu.memory_space<vmem>>, vector<2x2048xf32>
    %c0_1 = arith.constant 0 : index
    %c0_2 = arith.constant 0 : index
    %1 = vector.load %arg1[%c0_1, %c0_2] : memref<2048x8xf32, #tpu.memory_space<vmem>>, vector<2048x8xf32>
    %cst = arith.constant dense<0.000000e+00> : vector<2x8xf32>
    %2 = tpu.matmul %0, %1, %cst {dimension_numbers = #tpu.dot_dimension_numbers<[1], [0], [0], [1], [0, 0, 1, 1], [], []>} : vector<2x2048xf32>, vector<2048x8xf32>, vector<2x8xf32> -> vector<2x8xf32>
    %c0_3 = arith.constant 0 : index
    %c0_4 = arith.constant 0 : index
    %3 = vector.load %arg2[%c0_3, %c0_4] : memref<1x8xf32, #tpu.memory_space<vmem>>, vector<1x8xf32>
    %4 = vector.broadcast %3 : vector<1x8xf32> to vector<2x8xf32>
    %5 = arith.addf %2, %4 : vector<2x8xf32>
    %cst_5 = arith.constant dense<0xFF800000> : vector<2xf32>
    %6 = vector.multi_reduction <maximumf>, %5, %cst_5 [1] : vector<2x8xf32> to vector<2xf32>
    %7 = vector.shape_cast %6 : vector<2xf32> to vector<2x1xf32>
    %8 = vector.broadcast %7 : vector<2x1xf32> to vector<2x8xf32>
    %9 = arith.subf %5, %8 : vector<2x8xf32>
    %10 = math.exp %9 : vector<2x8xf32>
    %cst_6 = arith.constant dense<0.000000e+00> : vector<2xf32>
    %11 = vector.multi_reduction <add>, %10, %cst_6 [1] : vector<2x8xf32> to vector<2xf32>
    %12 = vector.shape_cast %11 : vector<2xf32> to vector<2x1xf32>
    %13 = math.log %12 : vector<2x1xf32>
    %14 = arith.addf %7, %13 : vector<2x1xf32>
    %15 = vector.broadcast %14 : vector<2x1xf32> to vector<2x8xf32>
    %16 = arith.subf %5, %15 : vector<2x8xf32>
    %c0_7 = arith.constant 0 : index
    %c0_8 = arith.constant 0 : index
    %17 = vector.load %arg3[%c0_7, %c0_8] : memref<2x8xf32, #tpu.memory_space<vmem>>, vector<2x8xf32>
    tpu.vector_store %arg3[%c0_7, %c0_8], %16 {strides = array<i32>} : memref<2x8xf32, #tpu.memory_space<vmem>>, vector<2x8xf32>,
    return
  }
}

</mosaic_0001>

<bundles_post_ra>
// kernel: tpu_custom_call.1
= control target key start
LH: loop header
LB: loop body
LE: loop exit
PB: predicated region body
PF: predicated region fallthrough
CT: control target
= control target key end

     0   :  { %v1530_v47 = vmov 1983009808   ;;  %v290_v49 = vlaneseq  ;;  %s2390_s0 = inlined_call_operand.vmem [shape: f32[2,2048], index: 0, kind: input, shape index: {}]   ;;  %s2391_s1 = inlined_call_operand.vmem [shape: f32[2048,8], index: 1, kind: input, shape index: {}]   ;;  %s2392_s2 = inlined_call_operand.vmem [shape: f32[1,8], index: 2, kind: input, shape index: {}]   ;;  %s2393_s3 = inlined_call_operand.hbm [shape: f32[2,8], index: 3, kind: output, shape index: {}]  }
   0x1   :  { %v35_v0 = vld [vmem:[%s2391_s1 + $0x80] sm:$0xff]  ;;  %v36_v1 = vld [vmem:[%s2391_s1 + $0x88] sm:$0xff]  ;;  %v37_v11 = vld [vmem:[%s2391_s1 + $0x90] sm:$0xff]  ;;  %v288_v48 = vunpack.c.l.s4 %v1530_v47 }
   0x2   :  { %v19_v2 = vld [vmem:[%s2391_s1] sm:$0xff]  ;;  %v1240_v3 = vpack.c.bf16 %v36_v1, %v35_v0  ;;  %v20_v4 = vld [vmem:[%s2391_s1 + $0x8] sm:$0xff]  ;;  %v38_v13 = vld [vmem:[%s2391_s1 + $0x98] sm:$0xff]  ;;  %v291_v0 = vshrl.u32 %v290_v49, 7 }
   0x3   :  { %v67_v5 = vld [vmem:[%s2391_s1 + $0x180] sm:$0xff]  ;;  %v68_v6 = vld [vmem:[%s2391_s1 + $0x188] sm:$0xff]  ;;  %v1242_v7 = vpack.c.bf16 %v20_v4, %v19_v2  ;;  %v21_v14 = vld [vmem:[%s2391_s1 + $0x10] sm:$0xff]  ;;  %v1244_v16 = vpack.c.bf16 %v38_v13, %v37_v11  ;;  %v289_v63 = vunpack.c.0.s8 %v288_v48 }
   0x4   :  { %v1272_v8 = vpack.c.bf16 %v68_v6, %v67_v5  ;;  %v51_v9 = vld [vmem:[%s2391_s1 + $0x100] sm:$0xff]  ;;  %v52_v10 = vld [vmem:[%s2391_s1 + $0x108] sm:$0xff]  ;;  %1241 = vmatprep.subr.bf16.mxu0 %v1240_v3  ;;  %v22_v15 = vld [vmem:[%s2391_s1 + $0x18] sm:$0xff] }
   0x5   :  { %v1274_v12 = vpack.c.bf16 %v52_v10, %v51_v9  ;;  %1243 = vmatpush3.bf16.msra.mxu0 %v1242_v7  ;;  %v1246_v17 = vpack.c.bf16 %v22_v15, %v21_v14  ;;  %v69_v18 = vld [vmem:[%s2391_s1 + $0x190] sm:$0xff]  ;;  %v70_v19 = vld [vmem:[%s2391_s1 + $0x198] sm:$0xff]  ;;  %v39_v23 = vld [vmem:[%s2391_s1 + $0xa0] sm:$0xff]  ;;  %v1702_v13 = vsub.s32 %v289_v63, %v291_v0 }
   0x6   :  { %1273 = vmatprep.subr.bf16.mxu1 %v1272_v8  ;;  %v53_v20 = vld [vmem:[%s2391_s1 + $0x110] sm:$0xff]  ;;  %v1276_v21 = vpack.c.bf16 %v70_v19, %v69_v18  ;;  %v54_v22 = vld [vmem:[%s2391_s1 + $0x118] sm:$0xff]  ;;  %v40_v24 = vld [vmem:[%s2391_s1 + $0xa8] sm:$0xff]  ;;  %1245 = vmatprep.subr.bf16.mxu0 %v1244_v16 }
   0x7   :  { %1275 = vmatpush3.bf16.msra.mxu1 %v1274_v12  ;;  %v1278_v25 = vpack.c.bf16 %v54_v22, %v53_v20  ;;  %v1248_v26 = vpack.c.bf16 %v40_v24, %v39_v23  ;;  %v23_v27 = vld [vmem:[%s2391_s1 + $0x20] sm:$0xff]  ;;  %v24_v28 = vld [vmem:[%s2391_s1 + $0x28] sm:$0xff]  ;;  %v41_v35 = vld [vmem:[%s2391_s1 + $0xb0] sm:$0xff] }
   0x8   :  { %v71_v29 = vld [vmem:[%s2391_s1 + $0x1a0] sm:$0xff]  ;;  %1277 = vmatprep.subr.bf16.mxu1 %v1276_v21  ;;  %v72_v30 = vld [vmem:[%s2391_s1 + $0x1a8] sm:$0xff]  ;;  %v1250_v33 = vpack.c.bf16 %v24_v28, %v23_v27  ;;  %v42_v36 = vld [vmem:[%s2391_s1 + $0xb8] sm:$0xff] }
   0x9   :  { %v55_v31 = vld [vmem:[%s2391_s1 + $0x120] sm:$0xff]  ;;  %v56_v32 = vld [vmem:[%s2391_s1 + $0x128] sm:$0xff]  ;;  %1247 = vmatpush3.bf16.msra.mxu0 %v1246_v17  ;;  %v1280_v34 = vpack.c.bf16 %v72_v30, %v71_v29  ;;  %v25_v37 = vld [vmem:[%s2391_s1 + $0x30] sm:$0xff]  ;;  %v1252_v39 = vpack.c.bf16 %v42_v36, %v41_v35 }
   0xa   :  { %1249 = vmatprep.subr.bf16.mxu0 %v1248_v26  ;;  %v1282_v38 = vpack.c.bf16 %v56_v32, %v55_v31  ;;  %v26_v40 = vld [vmem:[%s2391_s1 + $0x38] sm:$0xff]  ;;  %v73_v41 = vld [vmem:[%s2391_s1 + $0x1b0] sm:$0xff]  ;;  %v43_v46 = vld [vmem:[%s2391_s1 + $0xc0] sm:$0xff] }
   0xb   :  { %1279 = vmatpush3.bf16.msra.mxu1 %v1278_v25  ;;  %v74_v42 = vld [vmem:[%s2391_s1 + $0x1b8] sm:$0xff]  ;;  %v57_v44 = vld [vmem:[%s2391_s1 + $0x130] sm:$0xff]  ;;  %v44_v50 = vld [vmem:[%s2391_s1 + $0xc8] sm:$0xff]  ;;  %v1254_v51 = vpack.c.bf16 %v26_v40, %v25_v37 }
   0xc   :  { %1281 = vmatprep.subr.bf16.mxu1 %v1280_v34  ;;  %v1284_v43 = vpack.c.bf16 %v74_v42, %v73_v41  ;;  %v58_v45 = vld [vmem:[%s2391_s1 + $0x138] sm:$0xff]  ;;  %v75_v52 = vld [vmem:[%s2391_s1 + $0x1c0] sm:$0xff]  ;;  %v76_v53 = vld [vmem:[%s2391_s1 + $0x1c8] sm:$0xff]  ;;  %v1256_v55 = vpack.c.bf16 %v44_v50, %v43_v46 }
   0xd   :  { %1251 = vmatpush3.bf16.msra.mxu0 %v1250_v33  ;;  %v1286_v54 = vpack.c.bf16 %v58_v45, %v57_v44  ;;  %v27_v56 = vld [vmem:[%s2391_s1 + $0x40] sm:$0xff]  ;;  %v28_v57 = vld [vmem:[%s2391_s1 + $0x48] sm:$0xff]  ;;  %v1288_v59 = vpack.c.bf16 %v76_v53, %v75_v52  ;;  %v45_v61 = vld [vmem:[%s2391_s1 + $0xd0] sm:$0xff] }
   0xe   :  { %1253 = vmatprep.subr.bf16.mxu0 %v1252_v39  ;;  %v59_v58 = vld [vmem:[%s2391_s1 + $0x140] sm:$0xff]  ;;  %v60_v60 = vld [vmem:[%s2391_s1 + $0x148] sm:$0xff]  ;;  %v46_v62 = vld [vmem:[%s2391_s1 + $0xd8] sm:$0xff]  ;;  %v1258_v3 = vpack.c.bf16 %v28_v57, %v27_v56 }
   0xf   :  { %1283 = vmatpush3.bf16.msra.mxu1 %v1282_v38  ;;  %v77_v1 = vld [vmem:[%s2391_s1 + $0x1d0] sm:$0xff]  ;;  %v78_v2 = vld [vmem:[%s2391_s1 + $0x1d8] sm:$0xff]  ;;  %v1290_v4 = vpack.c.bf16 %v60_v60, %v59_v58  ;;  %v1260_v5 = vpack.c.bf16 %v46_v62, %v45_v61  ;;  %v47_v11 = vld [vmem:[%s2391_s1 + $0xe0] sm:$0xff] }
  0x10   :  { %1285 = vmatprep.subr.bf16.mxu1 %v1284_v43  ;;  %v29_v6 = vld [vmem:[%s2391_s1 + $0x50] sm:$0xff]  ;;  %v30_v7 = vld [vmem:[%s2391_s1 + $0x58] sm:$0xff]  ;;  %v1292_v9 = vpack.c.bf16 %v78_v2, %v77_v1  ;;  %v48_v12 = vld [vmem:[%s2391_s1 + $0xe8] sm:$0xff] }
  0x11   :  { %1255 = vmatpush3.bf16.msra.mxu0 %v1254_v51  ;;  %v61_v8 = vld [vmem:[%s2391_s1 + $0x150] sm:$0xff]  ;;  %v62_v10 = vld [vmem:[%s2391_s1 + $0x158] sm:$0xff]  ;;  %v79_v14 = vld [vmem:[%s2391_s1 + $0x1e0] sm:$0xff]  ;;  %v1262_v16 = vpack.c.bf16 %v30_v7, %v29_v6  ;;  %v1264_v19 = vpack.c.bf16 %v48_v12, %v47_v11 }
  0x12   :  { %1257 = vmatprep.subr.bf16.mxu0 %v1256_v55  ;;  %v80_v15 = vld [vmem:[%s2391_s1 + $0x1e8] sm:$0xff]  ;;  %v31_v17 = vld [vmem:[%s2391_s1 + $0x60] sm:$0xff]  ;;  %v1294_v18 = vpack.c.bf16 %v62_v10, %v61_v8  ;;  %v49_v25 = vld [vmem:[%s2391_s1 + $0xf0] sm:$0xff] }
  0x13   :  { %1287 = vmatpush3.bf16.msra.mxu1 %v1286_v54  ;;  %v32_v20 = vld [vmem:[%s2391_s1 + $0x68] sm:$0xff]  ;;  %v63_v21 = vld [vmem:[%s2391_s1 + $0x160] sm:$0xff]  ;;  %v1296_v23 = vpack.c.bf16 %v80_v15, %v79_v14  ;;  %v50_v26 = vld [vmem:[%s2391_s1 + $0xf8] sm:$0xff] }
  0x14   :  { %1289 = vmatprep.subr.bf16.mxu1 %v1288_v59  ;;  %v15_v22 = vld [vmem:[%s2390_s0] sm:$0xff]  ;;  %v64_v24 = vld [vmem:[%s2391_s1 + $0x168] sm:$0xff]  ;;  %v81_v29 = vld [vmem:[%s2391_s1 + $0x1f0] sm:$0xff]  ;;  %v1266_v31 = vpack.c.bf16 %v32_v20, %v31_v17  ;;  %v1268_v35 = vpack.c.bf16 %v50_v26, %v49_v25 }
  0x15   :  { %1259 = vmatpush3.bf16.msra.mxu0 %v1258_v3  ;;  %v293_v27 = vrot.slane %v15_v22, %v1702_v13  ;;  %v286_v28 = vcombine.high %v15_v22, %v15_v22  ;;  %v82_v30 = vld [vmem:[%s2391_s1 + $0x1f8] sm:$0xff]  ;;  %v1298_v34 = vpack.c.bf16 %v64_v24, %v63_v21  ;;  %v33_v36 = vld [vmem:[%s2391_s1 + $0x70] sm:$0xff]  ;;  %v99_v41 = vld [vmem:[%s2391_s1 + $0x280] sm:$0xff] }
  0x16   :  { %1261 = vmatprep.subr.bf16.mxu0 %v1260_v5  ;;  %v34_v37 = vld [vmem:[%s2391_s1 + $0x78] sm:$0xff]  ;;  %v65_v38 = vld [vmem:[%s2391_s1 + $0x170] sm:$0xff]  ;;  %v1300_v39 = vpack.c.bf16 %v82_v30, %v81_v29  ;;  %v100_v42 = vld [vmem:[%s2391_s1 + $0x288] sm:$0xff] }
  0x17   :  { %1291 = vmatpush3.bf16.msra.mxu1 %v1290_v4  ;;  %v301_v32 = vcombine.high %v293_v27, %v293_v27  ;;  %v300_v33 = vrot.slane %v286_v28, %v1702_v13  ;;  %v66_v40 = vld [vmem:[%s2391_s1 + $0x178] sm:$0xff]  ;;  %v131_v44 = vld [vmem:[%s2391_s1 + $0x380] sm:$0xff]  ;;  %v132_v45 = vld [vmem:[%s2391_s1 + $0x388] sm:$0xff]  ;;  %v1270_v46 = vpack.c.bf16 %v34_v37, %v33_v36  ;;  %v1304_v48 = vpack.c.bf16 %v100_v42, %v99_v41 }
  0x18   :  { %1293 = vmatprep.subr.bf16.mxu1 %v1292_v9  ;;  %v1302_v47 = vpack.c.bf16 %v66_v40, %v65_v38  ;;  %v83_v49 = vld [vmem:[%s2391_s1 + $0x200] sm:$0xff]  ;;  %v84_v50 = vld [vmem:[%s2391_s1 + $0x208] sm:$0xff]  ;;  %v1336_v52 = vpack.c.bf16 %v132_v45, %v131_v44  ;;  %v101_v54 = vld [vmem:[%s2391_s1 + $0x290] sm:$0xff] }
  0x19   :  { %1263 = vmatpush3.bf16.msra.mxu0 %v1262_v16  ;;  %434 = vmatprep.mubr.f32.mxu0 %v301_v32  ;;  %v302_v43 = vcombine.high %v300_v33, %v300_v33  ;;  %v115_v51 = vld [vmem:[%s2391_s1 + $0x300] sm:$0xff]  ;;  %v116_v53 = vld [vmem:[%s2391_s1 + $0x308] sm:$0xff]  ;;  %v102_v55 = vld [vmem:[%s2391_s1 + $0x298] sm:$0xff]  ;;  %v1306_v58 = vpack.c.bf16 %v84_v50, %v83_v49 }
  0x1a   :  { %1265 = vmatprep.subr.bf16.mxu0 %v1264_v19  ;;  %v133_v56 = vld [vmem:[%s2391_s1 + $0x390] sm:$0xff]  ;;  %v134_v57 = vld [vmem:[%s2391_s1 + $0x398] sm:$0xff]  ;;  %v1338_v59 = vpack.c.bf16 %v116_v53, %v115_v51  ;;  %v1308_v60 = vpack.c.bf16 %v102_v55, %v101_v54  ;;  %v103_v2 = vld [vmem:[%s2391_s1 + $0x2a0] sm:$0xff] }
  0x1b   :  { %1295 = vmatpush3.bf16.msra.mxu1 %v1294_v18  ;;  %504 = vmatprep.mubr.f32.mxu1 %v302_v43  ;;  %v85_v61 = vld [vmem:[%s2391_s1 + $0x210] sm:$0xff]  ;;  %v86_v62 = vld [vmem:[%s2391_s1 + $0x218] sm:$0xff]  ;;  %v1340_v0 = vpack.c.bf16 %v134_v57, %v133_v56  ;;  %v104_v3 = vld [vmem:[%s2391_s1 + $0x2a8] sm:$0xff] }
  0x1c   :  { %1297 = vmatprep.subr.bf16.mxu1 %v1296_v23  ;;  %v117_v63 = vld [vmem:[%s2391_s1 + $0x310] sm:$0xff]  ;;  %v118_v1 = vld [vmem:[%s2391_s1 + $0x318] sm:$0xff]  ;;  %v135_v4 = vld [vmem:[%s2391_s1 + $0x3a0] sm:$0xff]  ;;  %v1310_v6 = vpack.c.bf16 %v86_v62, %v85_v61  ;;  %v1312_v8 = vpack.c.bf16 %v104_v3, %v103_v2 }
  0x1d   :  { %1267 = vmatpush3.bf16.msra.mxu0 %v1266_v31  ;;  %v136_v5 = vld [vmem:[%s2391_s1 + $0x3a8] sm:$0xff]  ;;  %v1342_v7 = vpack.c.bf16 %v118_v1, %v117_v63  ;;  %v87_v9 = vld [vmem:[%s2391_s1 + $0x220] sm:$0xff]  ;;  %v105_v15 = vld [vmem:[%s2391_s1 + $0x2b0] sm:$0xff] }
  0x1e   :  { %1269 = vmatprep.subr.bf16.mxu0 %v1268_v35  ;;  %v88_v10 = vld [vmem:[%s2391_s1 + $0x228] sm:$0xff]  ;;  %v119_v11 = vld [vmem:[%s2391_s1 + $0x320] sm:$0xff]  ;;  %v1344_v12 = vpack.c.bf16 %v136_v5, %v135_v4  ;;  %v106_v16 = vld [vmem:[%s2391_s1 + $0x2b8] sm:$0xff] }
  0x1f   :  { %1299 = vmatpush3.bf16.msra.mxu1 %v1298_v34  ;;  %v120_v14 = vld [vmem:[%s2391_s1 + $0x328] sm:$0xff]  ;;  %v137_v17 = vld [vmem:[%s2391_s1 + $0x3b0] sm:$0xff]  ;;  %v138_v18 = vld [vmem:[%s2391_s1 + $0x3b8] sm:$0xff]  ;;  %v1314_v19 = vpack.c.bf16 %v88_v10, %v87_v9  ;;  %v1316_v21 = vpack.c.bf16 %v106_v16, %v105_v15 }
  0x20   :  { %1301 = vmatprep.subr.bf16.mxu1 %v1300_v39  ;;  %v1346_v20 = vpack.c.bf16 %v120_v14, %v119_v11  ;;  %v89_v22 = vld [vmem:[%s2391_s1 + $0x230] sm:$0xff]  ;;  %v90_v23 = vld [vmem:[%s2391_s1 + $0x238] sm:$0xff]  ;;  %v1348_v25 = vpack.c.bf16 %v138_v18, %v137_v17  ;;  %v108_v28 = vld [vmem:[%s2391_s1 + $0x2c8] sm:$0xff] }
  0x21   :  { %1271 = vmatpush3.bf16.msra.mxu0 %v1270_v46  ;;  %v121_v24 = vld [vmem:[%s2391_s1 + $0x330] sm:$0xff]  ;;  %v122_v26 = vld [vmem:[%s2391_s1 + $0x338] sm:$0xff]  ;;  %v139_v29 = vld [vmem:[%s2391_s1 + $0x3c0] sm:$0xff]  ;;  %v1318_v32 = vpack.c.bf16 %v90_v23, %v89_v22 }
  0x22   :  { %1305 = vmatprep.subr.bf16.mxu0 %v1304_v48  ;;  %v140_v30 = vld [vmem:[%s2391_s1 + $0x3c8] sm:$0xff]  ;;  %v1350_v35 = vpack.c.bf16 %v122_v26, %v121_v24  ;;  %v91_v37 = vld [vmem:[%s2391_s1 + $0x240] sm:$0xff]  ;;  %v109_v42 = vld [vmem:[%s2391_s1 + $0x2d0] sm:$0xff] }
  0x23   :  { %1303 = vmatpush3.bf16.msra.mxu1 %v1302_v47  ;;  %v16_v31 = vld [vmem:[%s2390_s0 + $0x8] sm:$0xff]  ;;  %v123_v39 = vld [vmem:[%s2391_s1 + $0x340] sm:$0xff]  ;;  %v1352_v40 = vpack.c.bf16 %v140_v30, %v139_v29  ;;  %v110_v43 = vld [vmem:[%s2391_s1 + $0x2d8] sm:$0xff] }
  0x24   :  { %1337 = vmatprep.subr.bf16.mxu1 %v1336_v52  ;;  %435 = vmatmul.mubr.f32.vlgmr.msra.gmra.mrb[0].mxu0 %v293_v27  ;;  %v107_v27 = vld [vmem:[%s2391_s1 + $0x2c0] sm:$0xff]  ;;  %v303_v34 = vcombine.high %v16_v31, %v16_v31  ;;  %v92_v38 = vld [vmem:[%s2391_s1 + $0x248] sm:$0xff]  ;;  %v141_v46 = vld [vmem:[%s2391_s1 + $0x3d0] sm:$0xff]  ;;  %v1324_v51 = vpack.c.bf16 %v110_v43, %v109_v42 }
  0x25   :  { %1307 = vmatpush3.bf16.msra.mxu0 %v1306_v58  ;;  %v1320_v36 = vpack.c.bf16 %v108_v28, %v107_v27  ;;  %v124_v41 = vld [vmem:[%s2391_s1 + $0x348] sm:$0xff]  ;;  %v142_v47 = vld [vmem:[%s2391_s1 + $0x3d8] sm:$0xff]  ;;  %v1322_v48 = vpack.c.bf16 %v92_v38, %v91_v37  ;;  %v93_v52 = vld [vmem:[%s2391_s1 + $0x250] sm:$0xff] }
  0x26   :  { %505 = vmatmul.mubr.f32.vlgmr.msra.gmra.mrb[0].mxu1 %v300_v33  ;;  %1309 = vmatprep.subr.bf16.mxu0 %v1308_v60  ;;  %v1863_v33 = vrot.slane %v16_v31, %v1702_v13  ;;  %v1886_v45 = vrot.slane %v303_v34, %v1702_v13  ;;  %v1354_v50 = vpack.c.bf16 %v124_v41, %v123_v39  ;;  %v94_v53 = vld [vmem:[%s2391_s1 + $0x258] sm:$0xff]  ;;  %v125_v54 = vld [vmem:[%s2391_s1 + $0x350] sm:$0xff]  ;;  %v111_v57 = vld [vmem:[%s2391_s1 + $0x2e0] sm:$0xff] }
  0x27   :  { %1339 = vmatpush3.bf16.msra.mxu1 %v1338_v59  ;;  %v1356_v55 = vpack.c.bf16 %v142_v47, %v141_v46  ;;  %v126_v56 = vld [vmem:[%s2391_s1 + $0x358] sm:$0xff]  ;;  %v112_v58 = vld [vmem:[%s2391_s1 + $0x2e8] sm:$0xff]  ;;  %v143_v59 = vld [vmem:[%s2391_s1 + $0x3e0] sm:$0xff]  ;;  %v1326_v61 = vpack.c.bf16 %v94_v53, %v93_v52 }
  0x28   :  { %1341 = vmatprep.subr.bf16.mxu1 %v1340_v0  ;;  %v318_v44 = vcombine.high %v1863_v33, %v1863_v33  ;;  %v319_v49 = vcombine.high %v1886_v45, %v1886_v45  ;;  %v144_v60 = vld [vmem:[%s2391_s1 + $0x3e8] sm:$0xff]  ;;  %v1358_v62 = vpack.c.bf16 %v126_v56, %v125_v54  ;;  %v1328_v63 = vpack.c.bf16 %v112_v58, %v111_v57  ;;  %v95_v0 = vld [vmem:[%s2391_s1 + $0x260] sm:$0xff]  ;;  %v113_v5 = vld [vmem:[%s2391_s1 + $0x2f0] sm:$0xff] }
  0x29   :  { %1311 = vmatpush3.bf16.msra.mxu0 %v1310_v6  ;;  %v96_v1 = vld [vmem:[%s2391_s1 + $0x268] sm:$0xff]  ;;  %v127_v2 = vld [vmem:[%s2391_s1 + $0x360] sm:$0xff]  ;;  %v1360_v3 = vpack.c.bf16 %v144_v60, %v143_v59  ;;  %v114_v6 = vld [vmem:[%s2391_s1 + $0x2f8] sm:$0xff] }
  0x2a   :  { %1313 = vmatprep.subr.bf16.mxu0 %v1312_v8  ;;  %574 = vmatprep.mubr.f32.mxu0 %v318_v44  ;;  %v128_v4 = vld [vmem:[%s2391_s1 + $0x368] sm:$0xff]  ;;  %v146_v8 = vld [vmem:[%s2391_s1 + $0x3f8] sm:$0xff]  ;;  %v1330_v9 = vpack.c.bf16 %v96_v1, %v95_v0  ;;  %v1332_v11 = vpack.c.bf16 %v114_v6, %v113_v5  ;;  %v129_v15 = vld [vmem:[%s2391_s1 + $0x370] sm:$0xff] }
  0x2b   :  { %1343 = vmatpush3.bf16.msra.mxu1 %v1342_v7  ;;  %644 = vmatprep.mubr.f32.mxu1 %v319_v49  ;;  %v145_v7 = vld [vmem:[%s2391_s1 + $0x3f0] sm:$0xff]  ;;  %v1362_v10 = vpack.c.bf16 %v128_v4, %v127_v2  ;;  %v98_v14 = vld [vmem:[%s2391_s1 + $0x278] sm:$0xff]  ;;  %v163_v18 = vld [vmem:[%s2391_s1 + $0x480] sm:$0xff] }
  0x2c   :  { %1345 = vmatprep.subr.bf16.mxu1 %v1344_v12  ;;  %v97_v12 = vld [vmem:[%s2391_s1 + $0x270] sm:$0xff]  ;;  %v1364_v16 = vpack.c.bf16 %v146_v8, %v145_v7  ;;  %v130_v17 = vld [vmem:[%s2391_s1 + $0x378] sm:$0xff]  ;;  %v147_v23 = vld [vmem:[%s2391_s1 + $0x400] sm:$0xff] }
  0x2d   :  { %1315 = vmatpush3.bf16.msra.mxu0 %v1314_v19  ;;  %v164_v19 = vld [vmem:[%s2391_s1 + $0x488] sm:$0xff]  ;;  %v1334_v22 = vpack.c.bf16 %v98_v14, %v97_v12  ;;  %v1366_v24 = vpack.c.bf16 %v130_v17, %v129_v15  ;;  %v179_v27 = vld [vmem:[%s2391_s1 + $0x500] sm:$0xff]  ;;  %v165_v30 = vld [vmem:[%s2391_s1 + $0x490] sm:$0xff] }
  0x2e   :  { %1317 = vmatprep.subr.bf16.mxu0 %v1316_v21  ;;  %v196_v21 = vld [vmem:[%s2391_s1 + $0x588] sm:$0xff]  ;;  %v166_v31 = vld [vmem:[%s2391_s1 + $0x498] sm:$0xff]  ;;  %v17_v37 = vld [vmem:[%s2390_s0 + $0x10] sm:$0xff] }
  0x2f   :  { %1347 = vmatpush3.bf16.msra.mxu1 %v1346_v20  ;;  %v195_v20 = vld [vmem:[%s2391_s1 + $0x580] sm:$0xff]  ;;  %v148_v26 = vld [vmem:[%s2391_s1 + $0x408] sm:$0xff]  ;;  %v198_v34 = vld [vmem:[%s2391_s1 + $0x598] sm:$0xff]  ;;  %v1372_v38 = vpack.c.bf16 %v166_v31, %v165_v30  ;;  %v2005_v42 = vrot.slane %v17_v37, %v1702_v13  ;;  %v320_v43 = vcombine.high %v17_v37, %v17_v37 }
  0x30   :  { %1349 = vmatprep.subr.bf16.mxu1 %v1348_v25  ;;  %v1368_v25 = vpack.c.bf16 %v164_v19, %v163_v18  ;;  %v180_v28 = vld [vmem:[%s2391_s1 + $0x508] sm:$0xff]  ;;  %v1400_v29 = vpack.c.bf16 %v196_v21, %v195_v20  ;;  %v149_v39 = vld [vmem:[%s2391_s1 + $0x410] sm:$0xff]  ;;  %v182_v46 = vld [vmem:[%s2391_s1 + $0x518] sm:$0xff] }
  0x31   :  { %1319 = vmatpush3.bf16.msra.mxu0 %v1318_v32  ;;  %v197_v32 = vld [vmem:[%s2391_s1 + $0x590] sm:$0xff]  ;;  %v167_v47 = vld [vmem:[%s2391_s1 + $0x4a0] sm:$0xff]  ;;  %v2026_v52 = vrot.slane %v320_v43, %v1702_v13  ;;  %v152_v56 = vld [vmem:[%s2391_s1 + $0x428] sm:$0xff] }
  0x32   :  { %1321 = vmatprep.subr.bf16.mxu0 %v1320_v36  ;;  %v1402_v36 = vpack.c.bf16 %v180_v28, %v179_v27  ;;  %v181_v41 = vld [vmem:[%s2391_s1 + $0x510] sm:$0xff]  ;;  %v1404_v44 = vpack.c.bf16 %v198_v34, %v197_v32  ;;  %v199_v49 = vld [vmem:[%s2391_s1 + $0x5a0] sm:$0xff]  ;;  %v184_v59 = vld [vmem:[%s2391_s1 + $0x528] sm:$0xff] }
  0x33   :  { %1351 = vmatpush3.bf16.msra.mxu1 %v1350_v35  ;;  %v1370_v35 = vpack.c.bf16 %v148_v26, %v147_v23  ;;  %v183_v57 = vld [vmem:[%s2391_s1 + $0x520] sm:$0xff]  ;;  %v169_v60 = vld [vmem:[%s2391_s1 + $0x4b0] sm:$0xff]  ;;  %v154_v4 = vld [vmem:[%s2391_s1 + $0x438] sm:$0xff] }
  0x34   :  { %1353 = vmatprep.subr.bf16.mxu1 %v1352_v40  ;;  %v150_v40 = vld [vmem:[%s2391_s1 + $0x418] sm:$0xff]  ;;  %v1410_v1 = vpack.c.bf16 %v184_v59, %v183_v57  ;;  %v185_v5 = vld [vmem:[%s2391_s1 + $0x530] sm:$0xff]  ;;  %v171_v8 = vld [vmem:[%s2391_s1 + $0x4c0] sm:$0xff] }
  0x35   :  { %1323 = vmatpush3.bf16.msra.mxu0 %v1322_v48  ;;  %v168_v48 = vld [vmem:[%s2391_s1 + $0x4a8] sm:$0xff]  ;;  %v1374_v53 = vpack.c.bf16 %v150_v40, %v149_v39  ;;  %v186_v7 = vld [vmem:[%s2391_s1 + $0x538] sm:$0xff]  ;;  %v187_v18 = vld [vmem:[%s2391_s1 + $0x540] sm:$0xff] }
  0x36   :  { %1325 = vmatprep.subr.bf16.mxu0 %v1324_v51  ;;  %v335_v51 = vcombine.high %v2005_v42, %v2005_v42  ;;  %v1376_v54 = vpack.c.bf16 %v168_v48, %v167_v47  ;;  %v1414_v14 = vpack.c.bf16 %v186_v7, %v185_v5  ;;  %v156_v17 = vld [vmem:[%s2391_s1 + $0x448] sm:$0xff]  ;;  %v173_v21 = vld [vmem:[%s2391_s1 + $0x4d0] sm:$0xff]  ;;  %v190_v32 = vld [vmem:[%s2391_s1 + $0x558] sm:$0xff] }
  0x37   :  { %1355 = vmatpush3.bf16.msra.mxu1 %v1354_v50  ;;  %v200_v50 = vld [vmem:[%s2391_s1 + $0x5a8] sm:$0xff]  ;;  %v205_v23 = vld [vmem:[%s2391_s1 + $0x5d0] sm:$0xff]  ;;  %v175_v34 = vld [vmem:[%s2391_s1 + $0x4e0] sm:$0xff] }
  0x38   :  { %1357 = vmatprep.subr.bf16.mxu1 %v1356_v55  ;;  %v151_v55 = vld [vmem:[%s2391_s1 + $0x420] sm:$0xff]  ;;  %v1408_v58 = vpack.c.bf16 %v200_v50, %v199_v49  ;;  %v188_v20 = vld [vmem:[%s2391_s1 + $0x548] sm:$0xff]  ;;  %v157_v28 = vld [vmem:[%s2391_s1 + $0x450] sm:$0xff] }
  0x39   :  { %1327 = vmatpush3.bf16.msra.mxu0 %v1326_v61  ;;  %v170_v61 = vld [vmem:[%s2391_s1 + $0x4b8] sm:$0xff]  ;;  %v1378_v0 = vpack.c.bf16 %v152_v56, %v151_v55  ;;  %v1418_v26 = vpack.c.bf16 %v188_v20, %v187_v18  ;;  %v189_v30 = vld [vmem:[%s2391_s1 + $0x550] sm:$0xff]  ;;  %v208_v37 = vld [vmem:[%s2391_s1 + $0x5e8] sm:$0xff] }
  0x3a   :  { %1329 = vmatprep.subr.bf16.mxu0 %v1328_v63  ;;  %v202_v63 = vld [vmem:[%s2391_s1 + $0x5b8] sm:$0xff]  ;;  %v1380_v2 = vpack.c.bf16 %v170_v61, %v169_v60  ;;  %v159_v39 = vld [vmem:[%s2391_s1 + $0x460] sm:$0xff]  ;;  %v1422_v40 = vpack.c.bf16 %v190_v32, %v189_v30  ;;  %v160_v43 = vld [vmem:[%s2391_s1 + $0x468] sm:$0xff] }
  0x3b   :  { %1359 = vmatpush3.bf16.msra.mxu1 %v1358_v62  ;;  %v201_v62 = vld [vmem:[%s2391_s1 + $0x5b0] sm:$0xff]  ;;  %v178_v49 = vld [vmem:[%s2391_s1 + $0x4f8] sm:$0xff] }
  0x3c   :  { %1361 = vmatprep.subr.bf16.mxu1 %v1360_v3  ;;  %v153_v3 = vld [vmem:[%s2391_s1 + $0x430] sm:$0xff]  ;;  %v1412_v6 = vpack.c.bf16 %v202_v63, %v201_v62 }
  0x3d   :  { %1331 = vmatpush3.bf16.msra.mxu0 %v1330_v9  ;;  %v172_v9 = vld [vmem:[%s2391_s1 + $0x4c8] sm:$0xff]  ;;  %v1382_v12 = vpack.c.bf16 %v154_v4, %v153_v3  ;;  %v177_v48 = vld [vmem:[%s2391_s1 + $0x4f0] sm:$0xff] }
  0x3e   :  { %1333 = vmatprep.subr.bf16.mxu0 %v1332_v11  ;;  %v204_v11 = vld [vmem:[%s2391_s1 + $0x5c8] sm:$0xff]  ;;  %v1384_v15 = vpack.c.bf16 %v172_v9, %v171_v8 }
  0x3f   :  { %1363 = vmatpush3.bf16.msra.mxu1 %v1362_v10  ;;  %v203_v10 = vld [vmem:[%s2391_s1 + $0x5c0] sm:$0xff] }
  0x40   :  { %1365 = vmatprep.subr.bf16.mxu1 %v1364_v16  ;;  %v155_v16 = vld [vmem:[%s2391_s1 + $0x440] sm:$0xff]  ;;  %v1416_v19 = vpack.c.bf16 %v204_v11, %v203_v10 }
  0x41   :  { %1335 = vmatpush3.bf16.msra.mxu0 %v1334_v22  ;;  %v174_v22 = vld [vmem:[%s2391_s1 + $0x4d8] sm:$0xff] }
  0x42   :  { %1369 = vmatprep.subr.bf16.mxu0 %v1368_v25  ;;  %v1386_v25 = vpack.c.bf16 %v156_v17, %v155_v16  ;;  %v1388_v27 = vpack.c.bf16 %v174_v22, %v173_v21 }
  0x43   :  { %1367 = vmatpush3.bf16.msra.mxu1 %v1366_v24  ;;  %v206_v24 = vld [vmem:[%s2391_s1 + $0x5d8] sm:$0xff] }
  0x44   :  { %1401 = vmatprep.subr.bf16.mxu1 %v1400_v29  ;;  %575 = vmatmul.mubr.f32.vlgmr.msra.gmra.mrb[2].mxu0 %v1863_v33  ;;  %v1406_v33 = vpack.c.bf16 %v182_v46, %v181_v41  ;;  %v158_v29 = vld [vmem:[%s2391_s1 + $0x458] sm:$0xff]  ;;  %v1420_v31 = vpack.c.bf16 %v206_v24, %v205_v23  ;;  %v192_v46 = vld [vmem:[%s2391_s1 + $0x568] sm:$0xff] }
  0x45   :  { %1371 = vmatpush3.bf16.msra.mxu0 %v1370_v35  ;;  %714 = vmatprep.mubr.f32.mxu0 %v335_v51  ;;  %v176_v35 = vld [vmem:[%s2391_s1 + $0x4e8] sm:$0xff] }
  0x46   :  { %645 = vmatmul.mubr.f32.vlgmr.msra.gmra.mrb[2].mxu1 %v1886_v45  ;;  %1373 = vmatprep.subr.bf16.mxu0 %v1372_v38  ;;  %v336_v45 = vcombine.high %v2026_v52, %v2026_v52  ;;  %v1390_v38 = vpack.c.bf16 %v158_v29, %v157_v28  ;;  %v1392_v41 = vpack.c.bf16 %v176_v35, %v175_v34 }
  0x47   :  { %1403 = vmatpush3.bf16.msra.mxu1 %v1402_v36  ;;  %v207_v36 = vld [vmem:[%s2391_s1 + $0x5e0] sm:$0xff] }
  0x48   :  { %1405 = vmatprep.subr.bf16.mxu1 %v1404_v44  ;;  %784 = vmatprep.mubr.f32.mxu1 %v336_v45  ;;  %v191_v44 = vld [vmem:[%s2391_s1 + $0x560] sm:$0xff]  ;;  %v1424_v47 = vpack.c.bf16 %v208_v37, %v207_v36 }
  0x49   :  { %1375 = vmatpush3.bf16.msra.mxu0 %v1374_v53 }
  0x4a   :  { %1377 = vmatprep.subr.bf16.mxu0 %v1376_v54 }
  0x4b   :  { %1407 = vmatpush3.bf16.msra.mxu1 %v1406_v33 }
  0x4c   :  { %1409 = vmatprep.subr.bf16.mxu1 %v1408_v58 }
  0x4d   :  { %1379 = vmatpush3.bf16.msra.mxu0 %v1378_v0 }
  0x4e   :  { %1381 = vmatprep.subr.bf16.mxu0 %v1380_v2 }
  0x4f   :  { %1411 = vmatpush3.bf16.msra.mxu1 %v1410_v1 }
  0x50   :  { %1413 = vmatprep.subr.bf16.mxu1 %v1412_v6 }
  0x51   :  { %1383 = vmatpush3.bf16.msra.mxu0 %v1382_v12 }
  0x52   :  { %1385 = vmatprep.subr.bf16.mxu0 %v1384_v15 }
  0x53   :  { %1415 = vmatpush3.bf16.msra.mxu1 %v1414_v14 }
  0x54   :  { %1417 = vmatprep.subr.bf16.mxu1 %v1416_v19 }
  0x55   :  { %1387 = vmatpush3.bf16.msra.mxu0 %v1386_v25 }
  0x56   :  { %1389 = vmatprep.subr.bf16.mxu0 %v1388_v27 }
  0x57   :  { %1419 = vmatpush3.bf16.msra.mxu1 %v1418_v26 }
  0x58   :  { %1421 = vmatprep.subr.bf16.mxu1 %v1420_v31 }
  0x59   :  { %8 = vsyncpa [#allocation3], 0  ;;  %v209_v50 = vld [vmem:[%s2391_s1 + $0x5f0] sm:$0xff]  ;;  %v210_v51 = vld [vmem:[%s2391_s1 + $0x5f8] sm:$0xff]  ;;  %1391 = vmatpush3.bf16.msra.mxu0 %v1390_v38  ;;  %v1394_v53 = vpack.c.bf16 %v160_v43, %v159_v39  ;;  %v1426_v54 = vpack.c.bf16 %v192_v46, %v191_v44  ;;  %v1396_v55 = vpack.c.bf16 %v178_v49, %v177_v48  ;;  %vm930_vm0 = vcmask 58368  }
  0x5a   :  { %v18_v33 = vld [vmem:[%s2390_s0 + $0x18] sm:$0xff]  ;;  %1393 = vmatprep.subr.bf16.mxu0 %v1392_v41  ;;  %v161_v56 = vld [vmem:[%s2391_s1 + $0x470] sm:$0xff]  ;;  %v1428_v58 = vpack.c.bf16 %v210_v51, %v209_v50  ;;  %v227_v60 = vld [vmem:[%s2391_s1 + $0x680] sm:$0xff] }
  0x5b   :  { %1423 = vmatpush3.bf16.msra.mxu1 %v1422_v40  ;;  %v162_v57 = vld [vmem:[%s2391_s1 + $0x478] sm:$0xff]  ;;  %v193_v45 = vld [vmem:[%s2391_s1 + $0x570] sm:$0xff]  ;;  %v228_v61 = vld [vmem:[%s2391_s1 + $0x688] sm:$0xff]  ;;  %v337_v0 = vcombine.high %v18_v33, %v18_v33  ;;  %v2197_v11 = vrot.slane %v18_v33, %v1702_v13 }
  0x5c   :  { %1425 = vmatprep.subr.bf16.mxu1 %v1424_v47  ;;  %v194_v59 = vld [vmem:[%s2391_s1 + $0x578] sm:$0xff]  ;;  %v259_v62 = vld [vmem:[%s2391_s1 + $0x780] sm:$0xff]  ;;  %v260_v63 = vld [vmem:[%s2391_s1 + $0x788] sm:$0xff]  ;;  %v1398_v1 = vpack.c.bf16 %v162_v57, %v161_v56  ;;  %v1432_v3 = vpack.c.bf16 %v228_v61, %v227_v60 }
  0x5d   :  { %1395 = vmatpush3.bf16.msra.mxu0 %v1394_v53  ;;  %v1430_v2 = vpack.c.bf16 %v194_v59, %v193_v45  ;;  %v211_v4 = vld [vmem:[%s2391_s1 + $0x600] sm:$0xff]  ;;  %v212_v5 = vld [vmem:[%s2391_s1 + $0x608] sm:$0xff]  ;;  %v1464_v7 = vpack.c.bf16 %v260_v63, %v259_v62  ;;  %v229_v9 = vld [vmem:[%s2391_s1 + $0x690] sm:$0xff]  ;;  %v2206_v15 = vrot.slane %v337_v0, %v1702_v13  ;;  %v352_v25 = vcombine.high %v2197_v11, %v2197_v11 }
  0x5e   :  { %1397 = vmatprep.subr.bf16.mxu0 %v1396_v55  ;;  %v243_v6 = vld [vmem:[%s2391_s1 + $0x700] sm:$0xff]  ;;  %v244_v8 = vld [vmem:[%s2391_s1 + $0x708] sm:$0xff]  ;;  %v230_v10 = vld [vmem:[%s2391_s1 + $0x698] sm:$0xff]  ;;  %v1434_v16 = vpack.c.bf16 %v212_v5, %v211_v4 }
  0x5f   :  { %1427 = vmatpush3.bf16.msra.mxu1 %v1426_v54  ;;  %v261_v12 = vld [vmem:[%s2391_s1 + $0x790] sm:$0xff]  ;;  %v262_v14 = vld [vmem:[%s2391_s1 + $0x798] sm:$0xff]  ;;  %v1466_v17 = vpack.c.bf16 %v244_v8, %v243_v6  ;;  %v1436_v18 = vpack.c.bf16 %v230_v10, %v229_v9  ;;  %v231_v23 = vld [vmem:[%s2391_s1 + $0x6a0] sm:$0xff]  ;;  %v353_v28 = vcombine.high %v2206_v15, %v2206_v15 }
  0x60   :  { %1429 = vmatprep.subr.bf16.mxu1 %v1428_v58  ;;  %v213_v19 = vld [vmem:[%s2391_s1 + $0x610] sm:$0xff]  ;;  %v214_v20 = vld [vmem:[%s2391_s1 + $0x618] sm:$0xff]  ;;  %v1468_v13 = vpack.c.bf16 %v262_v14, %v261_v12  ;;  %v232_v24 = vld [vmem:[%s2391_s1 + $0x6a8] sm:$0xff] }
  0x61   :  { %1399 = vmatpush3.bf16.msra.mxu0 %v1398_v1  ;;  %v245_v21 = vld [vmem:[%s2391_s1 + $0x710] sm:$0xff]  ;;  %v246_v22 = vld [vmem:[%s2391_s1 + $0x718] sm:$0xff]  ;;  %v263_v26 = vld [vmem:[%s2391_s1 + $0x7a0] sm:$0xff]  ;;  %v1438_v29 = vpack.c.bf16 %v214_v20, %v213_v19  ;;  %v1440_v31 = vpack.c.bf16 %v232_v24, %v231_v23 }
  0x62   :  { %1433 = vmatprep.subr.bf16.mxu0 %v1432_v3  ;;  %v264_v27 = vld [vmem:[%s2391_s1 + $0x7a8] sm:$0xff]  ;;  %v1470_v30 = vpack.c.bf16 %v246_v22, %v245_v21  ;;  %v247_v34 = vld [vmem:[%s2391_s1 + $0x720] sm:$0xff]  ;;  %v233_v36 = vld [vmem:[%s2391_s1 + $0x6b0] sm:$0xff] }
  0x63   :  { %1431 = vmatpush3.bf16.msra.mxu1 %v1430_v2  ;;  %v216_v32 = vld [vmem:[%s2391_s1 + $0x628] sm:$0xff]  ;;  %v1472_v35 = vpack.c.bf16 %v264_v27, %v263_v26  ;;  %v234_v37 = vld [vmem:[%s2391_s1 + $0x6b8] sm:$0xff]  ;;  %v265_v38 = vld [vmem:[%s2391_s1 + $0x7b0] sm:$0xff] }
  0x64   :  { %1465 = vmatprep.subr.bf16.mxu1 %v1464_v7  ;;  %715 = vmatmul.mubr.f32.vlgmr.msra.gmra.mrb[4].mxu0 %v2005_v42  ;;  %v215_v42 = vld [vmem:[%s2391_s1 + $0x620] sm:$0xff]  ;;  %v266_v39 = vld [vmem:[%s2391_s1 + $0x7b8] sm:$0xff]  ;;  %v1444_v43 = vpack.c.bf16 %v234_v37, %v233_v36  ;;  %v217_v44 = vld [vmem:[%s2391_s1 + $0x630] sm:$0xff] }
  0x65   :  { %1435 = vmatpush3.bf16.msra.mxu0 %v1434_v16  ;;  %854 = vmatprep.mubr.f32.mxu0 %v352_v25  ;;  %v1442_v40 = vpack.c.bf16 %v216_v32, %v215_v42  ;;  %v218_v46 = vld [vmem:[%s2391_s1 + $0x638] sm:$0xff]  ;;  %v249_v47 = vld [vmem:[%s2391_s1 + $0x730] sm:$0xff]  ;;  %v1476_v48 = vpack.c.bf16 %v266_v39, %v265_v38  ;;  %v235_v50 = vld [vmem:[%s2391_s1 + $0x6c0] sm:$0xff] }
  0x66   :  { %785 = vmatmul.mubr.f32.vlgmr.msra.gmra.mrb[4].mxu1 %v2026_v52  ;;  %1437 = vmatprep.subr.bf16.mxu0 %v1436_v18  ;;  %v248_v52 = vld [vmem:[%s2391_s1 + $0x728] sm:$0xff]  ;;  %v250_v49 = vld [vmem:[%s2391_s1 + $0x738] sm:$0xff]  ;;  %v267_v53 = vld [vmem:[%s2391_s1 + $0x7c0] sm:$0xff]  ;;  %v1446_v54 = vpack.c.bf16 %v218_v46, %v217_v44 }
  0x67   :  { %1467 = vmatpush3.bf16.msra.mxu1 %v1466_v17  ;;  %924 = vmatprep.mubr.f32.mxu1 %v353_v28  ;;  %v1474_v41 = vpack.c.bf16 %v248_v52, %v247_v34  ;;  %v236_v51 = vld [vmem:[%s2391_s1 + $0x6c8] sm:$0xff]  ;;  %v1478_v55 = vpack.c.bf16 %v250_v49, %v249_v47  ;;  %v219_v57 = vld [vmem:[%s2391_s1 + $0x640] sm:$0xff]  ;;  %v237_v61 = vld [vmem:[%s2391_s1 + $0x6d0] sm:$0xff] }
  0x68   :  { %1469 = vmatprep.subr.bf16.mxu1 %v1468_v13  ;;  %v268_v33 = vld [vmem:[%s2391_s1 + $0x7c8] sm:$0xff]  ;;  %v1448_v56 = vpack.c.bf16 %v236_v51, %v235_v50  ;;  %v251_v58 = vld [vmem:[%s2391_s1 + $0x740] sm:$0xff]  ;;  %v238_v62 = vld [vmem:[%s2391_s1 + $0x6d8] sm:$0xff] }
  0x69   :  { %1439 = vmatpush3.bf16.msra.mxu0 %v1438_v29  ;;  %v220_v45 = vld [vmem:[%s2391_s1 + $0x648] sm:$0xff]  ;;  %v1480_v59 = vpack.c.bf16 %v268_v33, %v267_v53  ;;  %v269_v63 = vld [vmem:[%s2391_s1 + $0x7d0] sm:$0xff]  ;;  %v270_v0 = vld [vmem:[%s2391_s1 + $0x7d8] sm:$0xff]  ;;  %v1452_v3 = vpack.c.bf16 %v238_v62, %v237_v61 }
  0x6a   :  { %1441 = vmatprep.subr.bf16.mxu0 %v1440_v31  ;;  %v252_v60 = vld [vmem:[%s2391_s1 + $0x748] sm:$0xff]  ;;  %v1450_v1 = vpack.c.bf16 %v220_v45, %v219_v57  ;;  %v221_v4 = vld [vmem:[%s2391_s1 + $0x650] sm:$0xff]  ;;  %v222_v5 = vld [vmem:[%s2391_s1 + $0x658] sm:$0xff]  ;;  %v1484_v7 = vpack.c.bf16 %v270_v0, %v269_v63 }
  0x6b   :  { %1471 = vmatpush3.bf16.msra.mxu1 %v1470_v30  ;;  %v1482_v2 = vpack.c.bf16 %v252_v60, %v251_v58  ;;  %v253_v6 = vld [vmem:[%s2391_s1 + $0x750] sm:$0xff]  ;;  %v254_v8 = vld [vmem:[%s2391_s1 + $0x758] sm:$0xff]  ;;  %v239_v9 = vld [vmem:[%s2391_s1 + $0x6e0] sm:$0xff]  ;;  %v1454_v16 = vpack.c.bf16 %v222_v5, %v221_v4 }
  0x6c   :  { %1473 = vmatprep.subr.bf16.mxu1 %v1472_v35  ;;  %v240_v10 = vld [vmem:[%s2391_s1 + $0x6e8] sm:$0xff]  ;;  %v271_v12 = vld [vmem:[%s2391_s1 + $0x7e0] sm:$0xff]  ;;  %v1486_v17 = vpack.c.bf16 %v254_v8, %v253_v6  ;;  %v241_v23 = vld [vmem:[%s2391_s1 + $0x6f0] sm:$0xff] }
  0x6d   :  { %1443 = vmatpush3.bf16.msra.mxu0 %v1442_v40  ;;  %v272_v14 = vld [vmem:[%s2391_s1 + $0x7e8] sm:$0xff]  ;;  %v1456_v18 = vpack.c.bf16 %v240_v10, %v239_v9  ;;  %v223_v19 = vld [vmem:[%s2391_s1 + $0x660] sm:$0xff]  ;;  %v242_v24 = vld [vmem:[%s2391_s1 + $0x6f8] sm:$0xff] }
  0x6e   :  { %1445 = vmatprep.subr.bf16.mxu0 %v1444_v43  ;;  %v224_v20 = vld [vmem:[%s2391_s1 + $0x668] sm:$0xff]  ;;  %v255_v21 = vld [vmem:[%s2391_s1 + $0x760] sm:$0xff]  ;;  %v1488_v13 = vpack.c.bf16 %v272_v14, %v271_v12  ;;  %v273_v25 = vld [vmem:[%s2391_s1 + $0x7f0] sm:$0xff]  ;;  %v1460_v29 = vpack.c.bf16 %v242_v24, %v241_v23 }
  0x6f   :  { %1475 = vmatpush3.bf16.msra.mxu1 %v1474_v41  ;;  %v256_v22 = vld [vmem:[%s2391_s1 + $0x768] sm:$0xff]  ;;  %v274_v26 = vld [vmem:[%s2391_s1 + $0x7f8] sm:$0xff]  ;;  %v1458_v27 = vpack.c.bf16 %v224_v20, %v223_v19  ;;  %v225_v30 = vld [vmem:[%s2391_s1 + $0x670] sm:$0xff] }
  0x70   :  { %1477 = vmatprep.subr.bf16.mxu1 %v1476_v48  ;;  %v1490_v28 = vpack.c.bf16 %v256_v22, %v255_v21  ;;  %v226_v31 = vld [vmem:[%s2391_s1 + $0x678] sm:$0xff]  ;;  %v1492_v42 = vpack.c.bf16 %v274_v26, %v273_v25  ;;  %v257_v32 = vld [vmem:[%s2391_s1 + $0x770] sm:$0xff]  ;;  %v959_v37 = vld [vmem:[%s2392_s2] ss:$0 sm:$0xff] }
  0x71   :  { %1447 = vmatpush3.bf16.msra.mxu0 %v1446_v54  ;;  %v258_v34 = vld [vmem:[%s2391_s1 + $0x778] sm:$0xff]  ;;  %v1462_v35 = vpack.c.bf16 %v226_v31, %v225_v30  ;;  %s1531_s1 = smov [#allocation2]  }
  0x72   :  { %1449 = vmatprep.subr.bf16.mxu0 %v1448_v56  ;;  %v1494_v52 = vpack.c.bf16 %v258_v34, %v257_v32  ;;  %s951_s2 = sshll.u32 %s1531_s1, 4  ;;  %s952_s2 = int_to_ptr.vmem [resolvable:$true] %s951_s2 }
  0x73   :  { %1479 = vmatpush3.bf16.msra.mxu1 %v1478_v55  ;;  %s1506_s16 = scalar_lea.vmem %s952_s2, 32  ;;  %p1511_p1 = scmp.lt.s32.totalorder %s952_s2, %s952_s2 }
  0x74   :  { %1481 = vmatprep.subr.bf16.mxu1 %v1480_v59  ;;  %p1507_p0 = scmp.ne.s32.totalorder %s952_s2, %s1506_s16  ;;  %p1512_p2 = scmp.lt.s32.totalorder %s1506_s16, %s1506_s16 }
  0x75   :  { %1451 = vmatpush3.bf16.msra.mxu0 %v1450_v1 }
  0x76   :  { %1453 = vmatprep.subr.bf16.mxu0 %v1452_v3  ;;  %p1513_p3 = por %p1512_p2, %p1511_p1 }
  0x77   :  { %1483 = vmatpush3.bf16.msra.mxu1 %v1482_v2 }
  0x78   :  { %1485 = vmatprep.subr.bf16.mxu1 %v1484_v7  ;;  %p1514_p4 = pnand %p1513_p3, %p1507_p0 }
  0x79   :  { %1455 = vmatpush3.bf16.msra.mxu0 %v1454_v16 }
  0x7a   :  { %1457 = vmatprep.subr.bf16.mxu0 %v1456_v18 }
  0x7b   :  { %1487 = vmatpush3.bf16.msra.mxu1 %v1486_v17 }
  0x7c   :  { %1489 = vmatprep.subr.bf16.mxu1 %v1488_v13 }
  0x7d   :  { %1459 = vmatpush3.bf16.msra.mxu0 %v1458_v27 }
  0x7e   :  { %1461 = vmatprep.subr.bf16.mxu0 %v1460_v29 }
  0x7f   :  { %1491 = vmatpush3.bf16.msra.mxu1 %v1490_v28 }
  0x80   :  { %1493 = vmatprep.subr.bf16.mxu1 %v1492_v42 }
  0x81   :  { %1463 = vmatpush3.bf16.msra.mxu0 %v1462_v35 }
  0x83   :  { %1495 = vmatpush3.bf16.msra.mxu1 %v1494_v52 }
  0x84   :  { %855 = vmatmul.mubr.f32.vlgmr.msra.gmra.mrb[6].mxu0 %v2197_v11 }
  0x86   :  { %925 = vmatmul.mubr.f32.vlgmr.msra.gmra.mrb[6].mxu1 %v2206_v15 }
  0xf7   :  { %v992_v36 = vpop.f32.mrb[0].mxu0 }
  0xf8   :  { %v993_v38 = vpop.f32.mrb[1].mxu0 }
  0xf9   :  { %v1027_v39 = vpop.f32.mrb[0].mxu1  ;;  %v994_v40 = vadd.f32 %v993_v38, %v992_v36 }
  0xfa   :  { %v1028_v41 = vpop.f32.mrb[1].mxu1 }
  0xfb   :  { %v1029_v43 = vadd.f32 %v1028_v41, %v1027_v39  ;;  %v437_v44 = vadd.f32 %v994_v40, %v959_v37 }
  0xfd   :  { %v507_v46 = vadd.f32 %v1029_v43, %v437_v44 }
 0x117   :  { %v1062_v47 = vpop.f32.mrb[2].mxu0 }
 0x118   :  { %v1063_v48 = vpop.f32.mrb[3].mxu0 }
 0x119   :  { %v1097_v49 = vpop.f32.mrb[2].mxu1  ;;  %v1064_v50 = vadd.f32 %v1063_v48, %v1062_v47 }
 0x11a   :  { %v1098_v51 = vpop.f32.mrb[3].mxu1 }
 0x11b   :  { %v1099_v11 = vadd.f32 %v1098_v51, %v1097_v49  ;;  %v577_v53 = vadd.f32 %v1064_v50, %v507_v46 }
 0x11d   :  { %v647_v15 = vadd.f32 %v1099_v11, %v577_v53 }
 0x137   :  { %v1132_v33 = vpop.f32.mrb[4].mxu0 }
 0x138   :  { %v1133_v54 = vpop.f32.mrb[5].mxu0 }
 0x139   :  { %v1167_v55 = vpop.f32.mrb[4].mxu1  ;;  %v1134_v56 = vadd.f32 %v1133_v54, %v1132_v33 }
 0x13a   :  { %v1168_v57 = vpop.f32.mrb[5].mxu1 }
 0x13b   :  { %v1169_v45 = vadd.f32 %v1168_v57, %v1167_v55  ;;  %v717_v58 = vadd.f32 %v1134_v56, %v647_v15 }
 0x13d   :  { %v787_v59 = vadd.f32 %v1169_v45, %v717_v58 }
 0x157   :  { %v1202_v60 = vpop.f32.mrb[6].mxu0 }
 0x158   :  { %v1203_v61 = vpop.f32.mrb[7].mxu0 }
 0x159   :  { %v1237_v62 = vpop.f32.mrb[6].mxu1  ;;  %v1204_v63 = vadd.f32 %v1203_v61, %v1202_v60 }
 0x15a   :  { %v1238_v0 = vpop.f32.mrb[7].mxu1 }
 0x15b   :  { %v1239_v1 = vadd.f32 %v1238_v0, %v1237_v62  ;;  %v857_v2 = vadd.f32 %v1204_v63, %v787_v59 }
 0x15d   :  { %v927_v3 = vadd.f32 %v1239_v1, %v857_v2 }
 0x15f   :  { %v931_v4 = vsel %vm930_vm0, %v927_v3, -inf }
 0x160   :  { %932 = vmax.xlane.f32.xlu0 %v931_v4 }
 0x1ed   :  { %v933_v5 = vpop.xlane.xlu0 %932 }
 0x1ee   :  { %v934_v6 = vsub.f32 %v927_v3, %v933_v5 }
 0x1f0   :  { %v935_v7 = vmul.f32 1.442695, %v934_v6 }
 0x1f2   :  { %1502 = vpow2.f32 %v935_v7 }
 0x1fc   :  { %v1503_v8 = vpop.eup %1502 }
 0x1fd   :  { %v937_v9 = vsel %vm930_vm0, %v1503_v8, 0.0 }
 0x1fe   :  { %938 = vadd.xlane.f32.xlu0 %v937_v9 }
 0x28b   :  { %v939_v10 = vpop.xlane.xlu0 %938 }
 0x28c   :  { %1504 = vlog2.f32 %v939_v10 }
 0x296   :  { %v1505_v12 = vpop.eup %1504 }
 0x297   :  { %v941_v14 = vmul.f32 0.6931472, %v1505_v12 }
 0x299   :  { %v942_v16 = vadd.f32 %v941_v14, %v933_v5 }
 0x29b   :  { %v943_v17 = vsub.f32 %v927_v3, %v942_v16 }
 0x29d   :  { %944 = vst.msk [vmem:[#allocation2] sm:$0x3] %vm930_vm0, %v943_v17 }
 0x29e   :  { %1517 = shalt.err (!%p1514_p4)
}
 0x29f   :  { %s1518_s19 = scalar_lea.hbm %s2393_s3, 32 }
 0x2a0   :  { %p1519_p5 = scmp.ne.s32.totalorder %s2393_s3, %s1518_s19  ;;  %p1522_p6 = scmp.lt.u32.totalorder %s1518_s19, %s2393_s3 }
 0x2a2   :  { %p1524_p7 = pnand %p1522_p6, %p1519_p5 }
 0x2a4   :  { %1527 = shalt.err (!%p1524_p7)
}
 0x2a5   :  { %954 = dma.vmem_to_hbm [thread:$0]  %s952_s2, 32, %s2393_s3, [#allocation3]  }
 0x2a6   :  { %1528 = dma.done.wait [#allocation3], 32  }
 0x2a7   :  { %1529 = vsyncadd [#allocation3], 4294967264 }
 0x2a8   :  { %958 = vsyncpa [#allocation3], 1 }

</bundles_post_ra>
